<compile_context>
chip_gen: v5e
topology: v5e:2x2
jax: 0.10.0
libtpu: 0.0.40
codegen_flags: <defaults>
</compile_context>

<pallas_src>
import math
import functools
import numpy as np
import jax
import jax.numpy as jnp
from jax.experimental import pallas as pl
from jax.experimental.pallas import tpu as pltpu


# ---------------- static permutation indices (numpy glue) ----------------

def bitreversal_permutation(n: int) -> np.ndarray:
    m = int(math.log2(n))
    assert n == 1 << m, "n must be a power of 2"
    perm = np.arange(n).reshape(n, 1)
    for _ in range(m):
        n1 = perm.shape[0] // 2
        perm = np.hstack((perm[:n1], perm[n1:]))
    return perm.squeeze(0)


def gen_forward_indices(length: int):
    n_level = int(np.log2(length)) - 1
    fwd = []
    base = np.arange(length)
    for level in range(n_level):
        bs = 2 ** (level + 2)
        idx = base.reshape(-1, length // bs, 2, bs // 2)
        idx = np.transpose(idx, (0, 1, 3, 2)).reshape(-1)
        fwd.append(idx)
    return fwd


# ---------------- weight construction (parameter-only, plain JAX) ----------------

def build_weight(length: int, phases,
                 coupler_transmission_factor_t: float = np.sqrt(2) / 2,
                 coupler_insertion_loss: float = 0.0):
    """Replicates TrainableButterfly.build_weight with bit_reversal=True, reverse=False,
    enable_last_level_phase_shifter=True, no quantizer, ideal crossings."""
    n_level = int(math.log2(length))
    t = coupler_transmission_factor_t
    k = np.sqrt(1.0 - coupler_insertion_loss - t ** 2)
    dc = jnp.array([[t, 1j * k], [1j * k, t]], dtype=jnp.complex64)

    brev = bitreversal_permutation(length)
    fwd = gen_forward_indices(length)

    W = jnp.eye(length, dtype=jnp.complex64)
    W = W[:, brev].reshape(length, length // 2, 2)                   # initial bit-reversal
    for level in range(n_level):
        W = W * jnp.exp(1j * phases[level].astype(jnp.complex64))    # phase shifters
        W = W @ dc                                                    # 2x2 coupler mixing
        if level < n_level - 1:                                       # butterfly permutation
            W = W.reshape(length, length)[:, fwd[level]]
            W = W.reshape(length, length // 2, 2)
    W = W * jnp.exp(1j * phases[n_level].astype(jnp.complex64))       # last-level phase shifter
    W = W.reshape(length, length)[:, brev]                            # final bit-reversal
    return W                                                          # (L, L) complex64


def build_weight_planes(W, Lp: int, dtype):
    """Transposed real/imag planes of W, zero-padded L -> Lp, cast to the compute dtype.
    Zero padding keeps the first L output lanes exact."""
    L = W.shape[0]
    pad = ((0, Lp - L), (0, Lp - L))
    WrT = jnp.pad(jnp.real(W).T.astype(jnp.float32), pad).astype(dtype)
    WiT = jnp.pad(jnp.imag(W).T.astype(jnp.float32), pad).astype(dtype)
    return WrT, WiT


# ---------------- Pallas kernels ----------------

def _bf_resident_kernel(xr_ref, xi_ref, wr_ref, wi_ref, or_ref, oi_ref):
    """Weight planes fully resident in VMEM; one M tile per grid step, no K axis."""
    xr = xr_ref[...]
    xi = xi_ref[...]
    wr = wr_ref[...]
    wi = wi_ref[...]
    or_ref[...] = (jnp.dot(xr, wr, preferred_element_type=jnp.float32)
                   - jnp.dot(xi, wi, preferred_element_type=jnp.float32))
    oi_ref[...] = (jnp.dot(xr, wi, preferred_element_type=jnp.float32)
                   + jnp.dot(xi, wr, preferred_element_type=jnp.float32))


def _bf_tiled_kernel(xr_ref, xi_ref, wr_ref, wi_ref, or_ref, oi_ref):
    """Tiled (M, N, K) matmul accumulating directly into the resident f32 output blocks
    (no scratch accumulator; outputs are f32 and stay resident across the K axis)."""
    @pl.when(pl.program_id(2) == 0)
    def _init():
        or_ref[...] = jnp.zeros_like(or_ref)
        oi_ref[...] = jnp.zeros_like(oi_ref)

    xr = xr_ref[...]
    xi = xi_ref[...]
    wr = wr_ref[...]
    wi = wi_ref[...]
    or_ref[...] += (jnp.dot(xr, wr, preferred_element_type=jnp.float32)
                    - jnp.dot(xi, wi, preferred_element_type=jnp.float32))
    oi_ref[...] += (jnp.dot(xr, wi, preferred_element_type=jnp.float32)
                    + jnp.dot(xi, wr, preferred_element_type=jnp.float32))


# ---------------- pallas_call wrappers ----------------

def _vmem_limit_bytes(footprint: int) -> int:
    # Raise v5e's 16 MiB scoped-VMEM default; cap at 48 MiB so we stay well inside
    # v7x's 64 MiB physical VMEM (v5e/v6e have 128 MiB physical).
    return int(min(max(footprint + (8 << 20), 32 << 20), 48 << 20))


def _butterfly_matmul_resident(xr, xi, WrT, WiT, *, tm):
    Mp, Lp = xr.shape
    wb = jnp.dtype(xr.dtype).itemsize
    flops = 8 * Mp * Lp * Lp
    bytes_accessed = 2 * Mp * Lp * wb + 2 * Lp * Lp * wb + 2 * Mp * Lp * 4
    # Conservative: pipeline double-buffers every blocked operand, even though the
    # constant weight index_map means the weight planes are only DMAed once.
    footprint = 4 * Lp * Lp * wb + 4 * tm * Lp * wb + 4 * tm * Lp * 4

    grid_spec = pltpu.PrefetchScalarGridSpec(
        num_scalar_prefetch=0,
        grid=(Mp // tm,),
        in_specs=[
            pl.BlockSpec((tm, Lp), lambda m: (m, 0)),      # xr
            pl.BlockSpec((tm, Lp), lambda m: (m, 0)),      # xi
            pl.BlockSpec((Lp, Lp), lambda m: (0, 0)),      # WrT (fetched once, constant index)
            pl.BlockSpec((Lp, Lp), lambda m: (0, 0)),      # WiT (fetched once, constant index)
        ],
        out_specs=[
            pl.BlockSpec((tm, Lp), lambda m: (m, 0)),      # real plane (lane-dense)
            pl.BlockSpec((tm, Lp), lambda m: (m, 0)),      # imag plane (lane-dense)
        ],
    )
    return pl.pallas_call(
        _bf_resident_kernel,
        out_shape=(jax.ShapeDtypeStruct((Mp, Lp), jnp.float32),
                   jax.ShapeDtypeStruct((Mp, Lp), jnp.float32)),
        grid_spec=grid_spec,
        compiler_params=pltpu.CompilerParams(
            dimension_semantics=("parallel",),
            vmem_limit_bytes=_vmem_limit_bytes(footprint)),
        cost_estimate=pl.CostEstimate(flops=flops, transcendentals=0,
                                      bytes_accessed=bytes_accessed),
    )(xr, xi, WrT, WiT)


def _butterfly_matmul_tiled(xr, xi, WrT, WiT, *, tm, tn, tk):
    Mp, K = xr.shape
    K2, N = WrT.shape
    assert K == K2 and Mp % tm == 0 and N % tn == 0 and K % tk == 0
    wb = jnp.dtype(xr.dtype).itemsize
    n_m, n_n = Mp // tm, N // tn
    flops = 8 * Mp * N * K
    bytes_accessed = (2 * Mp * K * wb * n_n        # xr, xi re-read per N tile
                      + 2 * K * N * wb * n_m       # WrT, WiT re-read per M tile
                      + 2 * Mp * N * 4)            # two f32 output planes
    footprint = 4 * tm * tk * wb + 4 * tk * tn * wb + 4 * tm * tn * 4

    grid_spec = pltpu.PrefetchScalarGridSpec(
        num_scalar_prefetch=0,
        grid=(n_m, n_n, K // tk),
        in_specs=[
            pl.BlockSpec((tm, tk), lambda m, n, k: (m, k)),
            pl.BlockSpec((tm, tk), lambda m, n, k: (m, k)),
            pl.BlockSpec((tk, tn), lambda m, n, k: (k, n)),
            pl.BlockSpec((tk, tn), lambda m, n, k: (k, n)),
        ],
        out_specs=[
            pl.BlockSpec((tm, tn), lambda m, n, k: (m, n)),
            pl.BlockSpec((tm, tn), lambda m, n, k: (m, n)),
        ],
    )
    return pl.pallas_call(
        _bf_tiled_kernel,
        out_shape=(jax.ShapeDtypeStruct((Mp, N), jnp.float32),
                   jax.ShapeDtypeStruct((Mp, N), jnp.float32)),
        grid_spec=grid_spec,
        compiler_params=pltpu.CompilerParams(
            dimension_semantics=("parallel", "parallel", "arbitrary"),
            vmem_limit_bytes=_vmem_limit_bytes(footprint)),
        cost_estimate=pl.CostEstimate(flops=flops, transcendentals=0,
                                      bytes_accessed=bytes_accessed),
    )(xr, xi, WrT, WiT)


# ---------------- tiling helpers ----------------

_RESIDENT_BUDGET = 36 * 1024 * 1024   # max estimated VMEM for the resident-weight path


def _round_up(a: int, b: int) -> int:
    return ((a + b - 1) // b) * b


def _pick_m_tile(B: int, cap: int):
    """Batch tile (multiple of 8) and padded batch. Keeps >= 2 parallel M tiles when
    possible so v7x's two TensorCores both get work (no-op on single-TC v5e/v6e)."""
    Mp = _round_up(max(B, 1), 8)
    tm = min(cap, Mp)
    if Mp // tm < 2 and Mp >= 16:
        tm = _round_up((Mp + 1) // 2, 8)
    Mp = _round_up(Mp, tm)
    return tm, Mp


def _pick_nk_tile(Lp: int) -> int:
    for t in (512, 256, 128):
        if Lp % t == 0:
            return t
    return 128  # unreachable: Lp is a multiple of 128


# ---------------- full forward ----------------

@functools.partial(jax.jit, static_argnames=("length", "compute_dtype", "force_tiled"))
def trainable_butterfly_forward(x, phases, length,
                                compute_dtype=jnp.bfloat16,
                                force_tiled=False):
    # x is real (..., L, 2) (real, imag), matching torch.view_as_complex input.
    xr = x[..., 0]
    xi = x[..., 1]
    out_shape = xr.shape                                   # (..., L)
    B = int(math.prod(out_shape[:-1]))

    Lp = _round_up(length, 128)                            # lane-dense padding
    wb = jnp.dtype(compute_dtype).itemsize

    # --- choose resident-weight vs tiled path (all static shape math) ---
    tm_res, Mp_res = _pick_m_tile(B, 256)
    resident_fp = 4 * Lp * Lp * wb + 4 * tm_res * Lp * wb + 4 * tm_res * Lp * 4
    use_resident = (not force_tiled) and resident_fp <= _RESIDENT_BUDGET

    if use_resident:
        tm, Mp = tm_res, Mp_res
        tn = tk = Lp
    else:
        tm, Mp = _pick_m_tile(B, 512 if B >= 512 else 256)
        tn = tk = _pick_nk_tile(Lp)

    # Pad activations to MXU/vreg-friendly sizes and cast to the compute dtype.
    # (For L a multiple of 128 and B a multiple of tm these pads are no-ops; they are
    # the only wrapper-side data movement left.)
    def prep(a):
        a = a.reshape(B, length).astype(compute_dtype)
        return jnp.pad(a, ((0, Mp - B), (0, Lp - length)))

    xrp, xip = prep(xr), prep(xi)

    W = build_weight(length, phases)                       # (L, L) complex64, param-only glue
    WrT, WiT = build_weight_planes(W, Lp, compute_dtype)   # two (Lp, Lp) planes

    if use_resident:
        out_r, out_i = _butterfly_matmul_resident(xrp, xip, WrT, WiT, tm=tm)
    else:
        out_r, out_i = _butterfly_matmul_tiled(xrp, xip, WrT, WiT, tm=tm, tn=tn, tk=tk)

    out = jax.lax.complex(out_r[:B, :length], out_i[:B, :length])
    return out.reshape(out_shape)


if __name__ == "__main__":
    L = 16                        # length (power of 2)
    n_level = int(math.log2(L))   # 4
    B0, B1 = 2, 4

    key = jax.random.PRNGKey(0)
    x = jax.random.normal(key, (B0, B1, L, 2), dtype=jnp.float32)

    # phases parameter: shape (n_level + 1, L//2, 2);
    # reset_parameters(alg='uniform') is uniform(-pi/2, -pi/2) == constant -pi/2.
    phases = jnp.full((n_level + 1, L // 2, 2), -np.pi / 2, dtype=jnp.float32)

    # pure-JAX reference for the complex matmul hot path
    xc_ref = jax.lax.complex(x[..., 0], x[..., 1]).reshape(-1, L)
    W_ref = build_weight(L, phases)
    ref = (xc_ref @ W_ref.T).reshape(B0, B1, L)

    # f32 resident-weight path (exact)
    out_f32 = jax.block_until_ready(
        trainable_butterfly_forward(x, phases, L, compute_dtype=jnp.float32))
    assert jnp.allclose(out_f32, ref, atol=1e-5, rtol=1e-5), "f32 resident path mismatch"

    # f32 tiled (K-accumulating) path
    out_tiled = jax.block_until_ready(
        trainable_butterfly_forward(x, phases, L, compute_dtype=jnp.float32,
                                    force_tiled=True))
    assert jnp.allclose(out_tiled, ref, atol=1e-5, rtol=1e-5), "f32 tiled path mismatch"

    # default bf16-in / f32-accumulate fast path (looser tolerance for bf16 inputs)
    out_bf16 = jax.block_until_ready(trainable_butterfly_forward(x, phases, L))
    assert jnp.allclose(out_bf16, ref, atol=5e-2, rtol=5e-2), "bf16 fast path mismatch"

    print("KERNEL_OK")
</pallas_src>

<mosaic_0001>
module attributes {stable_mosaic.version = 11 : i64} {
  func.func @_bf_resident_kernel(%arg0: i32, %arg1: memref<8x128xf32, #tpu.memory_space<vmem>>, %arg2: memref<8x128xf32, #tpu.memory_space<vmem>>, %arg3: memref<128x128xf32, #tpu.memory_space<vmem>>, %arg4: memref<128x128xf32, #tpu.memory_space<vmem>>, %arg5: memref<8x128xf32, #tpu.memory_space<vmem>>, %arg6: memref<8x128xf32, #tpu.memory_space<vmem>>) attributes {dimension_semantics = [#tpu.dimension_semantics<parallel>], iteration_bounds = array<i64: 1>, scalar_prefetch = 0 : i64, scratch_operands = 0 : i64, tpu.core_type = #tpu.core_type<tc>, window_params = [{transform_indices = @transform_0, window_bounds = array<i64: 8, 128>}, {transform_indices = @transform_1, window_bounds = array<i64: 8, 128>}, {pipeline_mode = #tpu.pipeline_mode<synchronous>, transform_indices = @transform_2, window_bounds = array<i64: 128, 128>}, {pipeline_mode = #tpu.pipeline_mode<synchronous>, transform_indices = @transform_3, window_bounds = array<i64: 128, 128>}, {transform_indices = @transform_4, window_bounds = array<i64: 8, 128>}, {transform_indices = @transform_5, window_bounds = array<i64: 8, 128>}]} {
    %c0 = arith.constant 0 : index
    %c0_0 = arith.constant 0 : index
    %0 = vector.load %arg1[%c0, %c0_0] : memref<8x128xf32, #tpu.memory_space<vmem>>, vector<8x128xf32>
    %c0_1 = arith.constant 0 : index
    %c0_2 = arith.constant 0 : index
    %1 = vector.load %arg2[%c0_1, %c0_2] : memref<8x128xf32, #tpu.memory_space<vmem>>, vector<8x128xf32>
    %c0_3 = arith.constant 0 : index
    %c0_4 = arith.constant 0 : index
    %2 = vector.load %arg3[%c0_3, %c0_4] : memref<128x128xf32, #tpu.memory_space<vmem>>, vector<128x128xf32>
    %c0_5 = arith.constant 0 : index
    %c0_6 = arith.constant 0 : index
    %3 = vector.load %arg4[%c0_5, %c0_6] : memref<128x128xf32, #tpu.memory_space<vmem>>, vector<128x128xf32>
    %cst = arith.constant dense<0.000000e+00> : vector<8x128xf32>
    %4 = tpu.matmul %0, %2, %cst {dimension_numbers = #tpu.dot_dimension_numbers<[1], [0], [0], [1], [0, 0, 1, 1], [], []>} : vector<8x128xf32>, vector<128x128xf32>, vector<8x128xf32> -> vector<8x128xf32>
    %cst_7 = arith.constant dense<0.000000e+00> : vector<8x128xf32>
    %5 = tpu.matmul %1, %3, %cst_7 {dimension_numbers = #tpu.dot_dimension_numbers<[1], [0], [0], [1], [0, 0, 1, 1], [], []>} : vector<8x128xf32>, vector<128x128xf32>, vector<8x128xf32> -> vector<8x128xf32>
    %6 = arith.subf %4, %5 : vector<8x128xf32>
    %c0_8 = arith.constant 0 : index
    %c0_9 = arith.constant 0 : index
    %7 = vector.load %arg5[%c0_8, %c0_9] : memref<8x128xf32, #tpu.memory_space<vmem>>, vector<8x128xf32>
    tpu.vector_store %arg5[%c0_8, %c0_9], %6 {strides = array<i32>} : memref<8x128xf32, #tpu.memory_space<vmem>>, vector<8x128xf32>,
    %cst_10 = arith.constant dense<0.000000e+00> : vector<8x128xf32>
    %8 = tpu.matmul %0, %3, %cst_10 {dimension_numbers = #tpu.dot_dimension_numbers<[1], [0], [0], [1], [0, 0, 1, 1], [], []>} : vector<8x128xf32>, vector<128x128xf32>, vector<8x128xf32> -> vector<8x128xf32>
    %cst_11 = arith.constant dense<0.000000e+00> : vector<8x128xf32>
    %9 = tpu.matmul %1, %2, %cst_11 {dimension_numbers = #tpu.dot_dimension_numbers<[1], [0], [0], [1], [0, 0, 1, 1], [], []>} : vector<8x128xf32>, vector<128x128xf32>, vector<8x128xf32> -> vector<8x128xf32>
    %10 = arith.addf %8, %9 : vector<8x128xf32>
    %c0_12 = arith.constant 0 : index
    %c0_13 = arith.constant 0 : index
    %11 = vector.load %arg6[%c0_12, %c0_13] : memref<8x128xf32, #tpu.memory_space<vmem>>, vector<8x128xf32>
    tpu.vector_store %arg6[%c0_12, %c0_13], %10 {strides = array<i32>} : memref<8x128xf32, #tpu.memory_space<vmem>>, vector<8x128xf32>,
    return
  }
  func.func @transform_0(%arg0: i32) -> (i32, i32) {
    %c0_i32 = arith.constant 0 : i32
    %c0_i32_0 = arith.constant 0 : i32
    return %arg0, %c0_i32 : i32, i32
  }
  func.func @transform_1(%arg0: i32) -> (i32, i32) {
    %c0_i32 = arith.constant 0 : i32
    %c0_i32_0 = arith.constant 0 : i32
    return %arg0, %c0_i32 : i32, i32
  }
  func.func @transform_2(%arg0: i32) -> (i32, i32) {
    %c0_i32 = arith.constant 0 : i32
    %c0_i32_0 = arith.constant 0 : i32
    %c0_i32_1 = arith.constant 0 : i32
    return %c0_i32, %c0_i32_0 : i32, i32
  }
  func.func @transform_3(%arg0: i32) -> (i32, i32) {
    %c0_i32 = arith.constant 0 : i32
    %c0_i32_0 = arith.constant 0 : i32
    %c0_i32_1 = arith.constant 0 : i32
    return %c0_i32, %c0_i32_0 : i32, i32
  }
  func.func @transform_4(%arg0: i32) -> (i32, i32) {
    %c0_i32 = arith.constant 0 : i32
    %c0_i32_0 = arith.constant 0 : i32
    return %arg0, %c0_i32 : i32, i32
  }
  func.func @transform_5(%arg0: i32) -> (i32, i32) {
    %c0_i32 = arith.constant 0 : i32
    %c0_i32_0 = arith.constant 0 : i32
    return %arg0, %c0_i32 : i32, i32
  }
}

</mosaic_0001>

<bundles_post_ra>
// kernel: custom-call
= control target key start
LH: loop header
LB: loop body
LE: loop exit
PB: predicated region body
PF: predicated region fallthrough
CT: control target
= control target key end

     0   :  { %s105_s0 = inlined_call_operand.vmem [shape: f32[2,4,16], index: 0, kind: input, shape index: {}]   ;;  %s106_s1 = inlined_call_operand.vmem [shape: f32[2,4,16], index: 1, kind: input, shape index: {}]   ;;  %s107_s2 = inlined_call_operand.hbm [shape: c64[2,4,16], index: 2, kind: output, shape index: {}]  }
   0x1   :  { %s3_s11 = scalar_lea.hbm %s107_s2, 8 }
   0x2   :  { %4 = vsyncpa [#allocation0], 0  ;;  %s6_s14 = sshll.u32 %s105_s0, 4  ;;  %s8_s17 = sshll.u32 %s107_s2, 4  ;;  %s7_s14 = int_to_ptr.vmem [resolvable:$true] %s6_s14  ;;  %s9_s17 = int_to_ptr.hbm [resolvable:$true] %s8_s17 }
   0x3   :  { %11 = dma.vmem_to_hbm [thread:$0]  %s7_s14, 128, %s9_s17, [#allocation0] }
   0x4   :  { %74 = dma.done.wait [#allocation0], 128  }
   0x5   :  { %75 = vsyncadd [#allocation0], 4294967168 }
   0x6   :  { %14 = vsyncpa [#allocation0], 1 }
   0x7   :  { %15 = vsyncpa [#allocation1], 0  ;;  %s17_s20 = sshll.u32 %s106_s1, 4  ;;  %s19_s21 = sshll.u32 %s3_s11, 4  ;;  %s18_s20 = int_to_ptr.vmem [resolvable:$true] %s17_s20  ;;  %s20_s21 = int_to_ptr.hbm [resolvable:$true] %s19_s21 }
   0x8   :  { %22 = dma.vmem_to_hbm [thread:$0]  %s18_s20, 128, %s20_s21, [#allocation1] }
   0x9   :  { %76 = dma.done.wait [#allocation1], 128  }
   0xa   :  { %77 = vsyncadd [#allocation1], 4294967168 }
   0xb   :  { %25 = vsyncpa [#allocation1], 1 }

// kernel: trainable_butterfly_forward.1
= control target key start
LH: loop header
LB: loop body
LE: loop exit
PB: predicated region body
PF: predicated region fallthrough
CT: control target
= control target key end

     0   :  { %s282_s2 = inlined_call_operand.vmem [shape: f32[128,128], index: 2, kind: input, shape index: {}]   ;;  %s283_s3 = inlined_call_operand.vmem [shape: f32[128,128], index: 3, kind: input, shape index: {}]   ;;  %s284_s1 = inlined_call_operand.vmem [shape: f32[8,128], index: 1, kind: input, shape index: {}]   ;;  %s285_s0 = inlined_call_operand.vmem [shape: f32[8,128], index: 0, kind: input, shape index: {}]   ;;  %s286_s4 = inlined_call_operand.vmem [shape: f32[8,128], index: 4, kind: output, shape index: {0}]   ;;  %s287_s5 = inlined_call_operand.vmem [shape: f32[8,128], index: 5, kind: output, shape index: {1}]  }
   0x1   :  { %v36_v0 = vld [vmem:[%s282_s2 + $0x78] sm:$0xff]  ;;  %v35_v2 = vld [vmem:[%s282_s2 + $0x70] sm:$0xff]  ;;  %v34_v4 = vld [vmem:[%s282_s2 + $0x68] sm:$0xff] }
   0x2   :  { %v52_v1 = vld [vmem:[%s283_s3 + $0x78] sm:$0xff]  ;;  %95 = vmatpush.msra.mxu2 %v36_v0  ;;  %v51_v3 = vld [vmem:[%s283_s3 + $0x70] sm:$0xff]  ;;  %v50_v5 = vld [vmem:[%s283_s3 + $0x68] sm:$0xff]  ;;  %53 = vmatpush.msra.mxu0 %v36_v0 }
   0x3   :  { %115 = vmatpush.msra.mxu3 %v52_v1  ;;  %73 = vmatpush.msra.mxu1 %v52_v1  ;;  %v33_v6 = vld [vmem:[%s282_s2 + $0x60] sm:$0xff]  ;;  %v32_v8 = vld [vmem:[%s282_s2 + $0x58] sm:$0xff]  ;;  %v31_v10 = vld [vmem:[%s282_s2 + $0x50] sm:$0xff] }
   0x4   :  { %96 = vmatpush.msra.mxu2 %v35_v2  ;;  %v49_v7 = vld [vmem:[%s283_s3 + $0x60] sm:$0xff]  ;;  %54 = vmatpush.msra.mxu0 %v35_v2  ;;  %v48_v9 = vld [vmem:[%s283_s3 + $0x58] sm:$0xff]  ;;  %v47_v11 = vld [vmem:[%s283_s3 + $0x50] sm:$0xff] }
   0x5   :  { %116 = vmatpush.msra.mxu3 %v51_v3  ;;  %74 = vmatpush.msra.mxu1 %v51_v3  ;;  %v30_v12 = vld [vmem:[%s282_s2 + $0x48] sm:$0xff]  ;;  %v29_v14 = vld [vmem:[%s282_s2 + $0x40] sm:$0xff]  ;;  %v28_v16 = vld [vmem:[%s282_s2 + $0x38] sm:$0xff] }
   0x6   :  { %97 = vmatpush.msra.mxu2 %v34_v4  ;;  %55 = vmatpush.msra.mxu0 %v34_v4  ;;  %v46_v13 = vld [vmem:[%s283_s3 + $0x48] sm:$0xff]  ;;  %v45_v15 = vld [vmem:[%s283_s3 + $0x40] sm:$0xff]  ;;  %v44_v17 = vld [vmem:[%s283_s3 + $0x38] sm:$0xff] }
   0x7   :  { %117 = vmatpush.msra.mxu3 %v50_v5  ;;  %75 = vmatpush.msra.mxu1 %v50_v5  ;;  %v27_v18 = vld [vmem:[%s282_s2 + $0x30] sm:$0xff]  ;;  %v26_v20 = vld [vmem:[%s282_s2 + $0x28] sm:$0xff]  ;;  %v25_v22 = vld [vmem:[%s282_s2 + $0x20] sm:$0xff] }
   0x8   :  { %98 = vmatpush.msra.mxu2 %v33_v6  ;;  %56 = vmatpush.msra.mxu0 %v33_v6  ;;  %v43_v19 = vld [vmem:[%s283_s3 + $0x30] sm:$0xff]  ;;  %v42_v21 = vld [vmem:[%s283_s3 + $0x28] sm:$0xff]  ;;  %v41_v23 = vld [vmem:[%s283_s3 + $0x20] sm:$0xff] }
   0x9   :  { %118 = vmatpush.msra.mxu3 %v49_v7  ;;  %76 = vmatpush.msra.mxu1 %v49_v7  ;;  %v24_v24 = vld [vmem:[%s282_s2 + $0x18] sm:$0xff]  ;;  %v23_v26 = vld [vmem:[%s282_s2 + $0x10] sm:$0xff]  ;;  %v22_v28 = vld [vmem:[%s282_s2 + $0x8] sm:$0xff] }
   0xa   :  { %99 = vmatpush.msra.mxu2 %v32_v8  ;;  %57 = vmatpush.msra.mxu0 %v32_v8  ;;  %v40_v25 = vld [vmem:[%s283_s3 + $0x18] sm:$0xff]  ;;  %v39_v27 = vld [vmem:[%s283_s3 + $0x10] sm:$0xff]  ;;  %v38_v29 = vld [vmem:[%s283_s3 + $0x8] sm:$0xff] }
   0xb   :  { %119 = vmatpush.msra.mxu3 %v48_v9  ;;  %77 = vmatpush.msra.mxu1 %v48_v9  ;;  %v21_v30 = vld [vmem:[%s282_s2] sm:$0xff] }
   0xc   :  { %100 = vmatpush.msra.mxu2 %v31_v10  ;;  %58 = vmatpush.msra.mxu0 %v31_v10  ;;  %v37_v31 = vld [vmem:[%s283_s3] sm:$0xff] }
   0xd   :  { %120 = vmatpush.msra.mxu3 %v47_v11  ;;  %78 = vmatpush.msra.mxu1 %v47_v11  ;;  %v20_v32 = vld [vmem:[%s284_s1] sm:$0xff] }
   0xe   :  { %101 = vmatpush.msra.mxu2 %v30_v12  ;;  %59 = vmatpush.msra.mxu0 %v30_v12  ;;  %v19_v33 = vld [vmem:[%s285_s0] sm:$0xff] }
   0xf   :  { %121 = vmatpush.msra.mxu3 %v46_v13  ;;  %79 = vmatpush.msra.mxu1 %v46_v13 }
  0x10   :  { %102 = vmatpush.msra.mxu2 %v29_v14  ;;  %60 = vmatpush.msra.mxu0 %v29_v14 }
  0x11   :  { %122 = vmatpush.msra.mxu3 %v45_v15  ;;  %80 = vmatpush.msra.mxu1 %v45_v15 }
  0x12   :  { %103 = vmatpush.msra.mxu2 %v28_v16  ;;  %61 = vmatpush.msra.mxu0 %v28_v16 }
  0x13   :  { %123 = vmatpush.msra.mxu3 %v44_v17  ;;  %81 = vmatpush.msra.mxu1 %v44_v17 }
  0x14   :  { %104 = vmatpush.msra.mxu2 %v27_v18  ;;  %62 = vmatpush.msra.mxu0 %v27_v18 }
  0x15   :  { %124 = vmatpush.msra.mxu3 %v43_v19  ;;  %82 = vmatpush.msra.mxu1 %v43_v19 }
  0x16   :  { %105 = vmatpush.msra.mxu2 %v26_v20  ;;  %63 = vmatpush.msra.mxu0 %v26_v20 }
  0x17   :  { %125 = vmatpush.msra.mxu3 %v42_v21  ;;  %83 = vmatpush.msra.mxu1 %v42_v21 }
  0x18   :  { %106 = vmatpush.msra.mxu2 %v25_v22  ;;  %64 = vmatpush.msra.mxu0 %v25_v22 }
  0x19   :  { %126 = vmatpush.msra.mxu3 %v41_v23  ;;  %84 = vmatpush.msra.mxu1 %v41_v23 }
  0x1a   :  { %107 = vmatpush.msra.mxu2 %v24_v24  ;;  %65 = vmatpush.msra.mxu0 %v24_v24 }
  0x1b   :  { %127 = vmatpush.msra.mxu3 %v40_v25  ;;  %85 = vmatpush.msra.mxu1 %v40_v25 }
  0x1c   :  { %108 = vmatpush.msra.mxu2 %v23_v26  ;;  %66 = vmatpush.msra.mxu0 %v23_v26 }
  0x1d   :  { %128 = vmatpush.msra.mxu3 %v39_v27  ;;  %86 = vmatpush.msra.mxu1 %v39_v27 }
  0x1e   :  { %109 = vmatpush.msra.mxu2 %v22_v28  ;;  %67 = vmatpush.msra.mxu0 %v22_v28 }
  0x1f   :  { %129 = vmatpush.msra.mxu3 %v38_v29  ;;  %87 = vmatpush.msra.mxu1 %v38_v29 }
  0x20   :  { %110 = vmatpush.msra.mxu2 %v21_v30  ;;  %68 = vmatpush.msra.mxu0 %v21_v30 }
  0x21   :  { %130 = vmatpush.msra.mxu3 %v37_v31  ;;  %111 = vmatmul.f32.vlgmr.msra.gmra.mxu2 %v20_v32 }
  0x22   :  { %131 = vmatmul.f32.vlgmr.msra.gmra.mxu3 %v19_v33  ;;  %88 = vmatpush.msra.mxu1 %v37_v31 }
  0x23   :  { %69 = vmatmul.f32.vlgmr.msra.gmra.mxu0 %v19_v33  ;;  %89 = vmatmul.f32.vlgmr.msra.gmra.mxu1 %v20_v32 }
  0xa0   :  { %v70_v34 = vpop.f32.mrf.mxu0  ;;  %v90_v35 = vpop.f32.mrf.mxu1 }
  0xa1   :  { %v93_v36 = vsub.f32 %v70_v34, %v90_v35 }
  0xa3   :  { %94 = vst [vmem:[%s286_s4] sm:$0xff] %v93_v36 }
  0xa4   :  { %v112_v37 = vpop.f32.mrf.mxu2 }
  0xa5   :  { %v132_v38 = vpop.f32.mrf.mxu3 }
  0xa6   :  { %v133_v39 = vadd.f32 %v132_v38, %v112_v37 }
  0xa8   :  { %135 = vst [vmem:[%s287_s5] sm:$0xff] %v133_v39 }

</bundles_post_ra>
